<compile_context>
chip_gen: v7x
topology: tpu7x:2x2x1
jax: 0.10.0
libtpu: 0.0.40
codegen_flags: <defaults>
</compile_context>

<pallas_src>
import functools

import jax
import jax.numpy as jnp
from jax.experimental import pallas as pl
from jax.experimental.pallas import tpu as pltpu


def _cdiv(a, b):
    return -(-a // b)


def _attn_general_kernel(hid_ref, w_ref, b_ref, enc_ref, out_ref, v_sc, c_sc,
                         *, tl, seq_len, seq_pad):
    """Fused (folded) Linear + score + softmax.

    hid_ref: (tB, H)        decoder hidden state (batch tile)
    w_ref:   (H, H)         Linear weight (out_features, in_features)
    b_ref:   (1, H)         Linear bias
    enc_ref: (tl, tB, H)    encoder outputs, native (L, B, H) layout, L-tiled
    out_ref: (seq_pad, tB)  resident scores -> softmax weights over L (axis 0)
    v_sc:    (tB, H) f32    v = hid @ W
    c_sc:    (1, tB) f32    c = hid . bias
    """
    li = pl.program_id(1)
    nl = pl.num_programs(1)

    # Once per batch-tile: fold the Linear layer into the hidden state.
    #   v[b, i] = sum_o hid[b, o] * W[o, i]    (tiny (tB,H)x(H,H) MXU matmul)
    #   c[b]    = sum_o hid[b, o] * bias[o]
    @pl.when(li == 0)
    def _init():
        hid = hid_ref[...].astype(jnp.float32)                       # (tB, H)
        v_sc[...] = jnp.dot(hid, w_ref[...].astype(jnp.float32),
                            preferred_element_type=jnp.float32)      # (tB, H)
        c_sc[...] = jnp.sum(b_ref[...].astype(jnp.float32)[:, None, :]
                            * hid[None, :, :], axis=2)               # (1, tB)

    # Streaming pass over this L-tile: scores[l, b] = sum_h enc[l,b,h] * v[b,h]
    # (VPU multiply + lane reduce; enc stays in its input dtype, promotion to
    #  f32 happens in-register against the f32 v).
    enc = enc_ref[...]                                               # (tl, tB, H)
    scores = jnp.sum(enc * v_sc[...][None, :, :], axis=2)            # (tl, tB) f32
    off = pl.multiple_of(li * tl, tl)
    out_ref[pl.ds(off, tl), :] = scores

    # Last L-tile of this batch-tile: softmax over L on the resident scores.
    @pl.when(li == nl - 1)
    def _finalize():
        s = out_ref[...] + c_sc[...]                                 # (seq_pad, tB)
        if seq_pad > seq_len:  # static: mask padded / ragged-edge rows
            row = jax.lax.broadcasted_iota(jnp.int32, (seq_pad, 1), 0)
            s = jnp.where(row < seq_len, s, -jnp.inf)
        m = jnp.max(s, axis=0, keepdims=True)                        # (1, tB)
        e = jnp.exp(s - m)
        denom = jnp.sum(e, axis=0, keepdims=True)                    # (1, tB)
        # Exact reciprocal: it acts on a (1, tB) vector once per batch-tile
        # (not on the streamed path), and keeps tight 1e-5 parity with the
        # unfused PyTorch reference.
        out_ref[...] = e * pl.reciprocal(denom, approx=False)


def attn_general(hidden, encoder_outputs, weight, bias, *,
                 max_block_bytes=4 * 1024 * 1024):
    """JAX wrapper mirroring Attn(method='general').forward.

    hidden:          (1, B, H)   (PyTorch layout)
    encoder_outputs: (L, B, H)   (PyTorch layout, streamed as-is — no transpose)
    weight:          (H, H)
    bias:            (H,)
    returns:         (B, 1, L) float32 attention weights
    """
    L, B, H = encoder_outputs.shape
    assert hidden.shape == (1, B, H), hidden.shape
    hid2d = hidden.reshape(B, H)          # squeeze leading 1 — free
    b2d = bias.reshape(1, H)

    # Batch tile: scores are laid out (L_pad, tB) with tB on lanes, so tB must
    # be a multiple of 128 or the full batch.  Small/medium batches -> 1 tile.
    if B > 128 and B % 128 == 0:
        tb = 128
    else:
        tb = B
    nb = B // tb

    # L tile: largest tile whose encoder block fits the per-buffer budget
    # (the BlockSpec pipeline double-buffers it).  Keep tl 8-aligned when
    # tiling so the dynamic sublane-offset stores stay aligned.
    bytes_per_row = tb * H * encoder_outputs.dtype.itemsize
    tl = max(1, min(L, max_block_bytes // max(1, bytes_per_row)))
    if tl < L:
        tl = max(8, (tl // 8) * 8)
    nl = _cdiv(L, tl)
    l_pad = nl * tl

    kernel = functools.partial(_attn_general_kernel, tl=tl, seq_len=L, seq_pad=l_pad)

    scores = pl.pallas_call(
        kernel,
        out_shape=jax.ShapeDtypeStruct((l_pad, B), jnp.float32),
        grid=(nb, nl),
        in_specs=[
            pl.BlockSpec((tb, H), lambda bi, li: (bi, 0)),            # hidden
            pl.BlockSpec((H, H), lambda bi, li: (0, 0)),              # weight
            pl.BlockSpec((1, H), lambda bi, li: (0, 0)),              # bias
            pl.BlockSpec((tl, tb, H), lambda bi, li: (li, bi, 0)),    # encoder outputs
        ],
        out_specs=pl.BlockSpec((l_pad, tb), lambda bi, li: (0, bi)),  # resident scores
        scratch_shapes=[
            pltpu.VMEM((tb, H), jnp.float32),   # v = hid @ W
            pltpu.VMEM((1, tb), jnp.float32),   # c = hid . bias
        ],
        compiler_params=pltpu.CompilerParams(
            dimension_semantics=("parallel", "arbitrary"),
            vmem_limit_bytes=32 * 1024 * 1024,
        ),
    )(hid2d, weight, b2d, encoder_outputs)

    # Only the tiny (L, B) attention matrix is transposed here — the large
    # encoder tensor is never relaid out in HBM.
    return scores[:L].T[:, None, :]                                   # (B, 1, L)


def _reference(hidden, encoder_outputs, weight, bias):
    """Pure-JAX reference of the PyTorch forward (method='general')."""
    energy = jnp.einsum("lbh,oh->lbo", encoder_outputs, weight) + bias   # (L, B, H)
    attn_energies = jnp.sum(hidden * energy, axis=2).T                   # (B, L)
    return jax.nn.softmax(attn_energies, axis=1)[:, None, :]             # (B, 1, L)


def _run_case(L, B, H, seed, **kwargs):
    key = jax.random.PRNGKey(seed)
    k1, k2, k3, k4 = jax.random.split(key, 4)
    hidden = jax.random.normal(k1, (1, B, H), dtype=jnp.float32)
    encoder_outputs = jax.random.normal(k2, (L, B, H), dtype=jnp.float32)
    # Deterministic Linear(H, H) parameters (synthetic init, not a checkpoint).
    bound = 1.0 / (H ** 0.5)
    weight = jax.random.uniform(k3, (H, H), minval=-bound, maxval=bound, dtype=jnp.float32)
    bias = jax.random.uniform(k4, (H,), minval=-bound, maxval=bound, dtype=jnp.float32)

    out = jax.block_until_ready(attn_general(hidden, encoder_outputs, weight, bias, **kwargs))
    ref = _reference(hidden, encoder_outputs, weight, bias)
    assert out.shape == (B, 1, L), (out.shape, (B, 1, L))
    assert jnp.allclose(out, ref, atol=1e-5, rtol=1e-5), (
        "mismatch vs reference, max abs err = "
        f"{jnp.max(jnp.abs(out - ref))}")


if __name__ == "__main__":
    # Small, deterministic shapes: seq L, batch B, hidden H.
    _run_case(L=8, B=2, H=32, seed=0)                            # single L-tile path
    _run_case(L=20, B=2, H=32, seed=1, max_block_bytes=2048)     # multi-tile + ragged edge + mask path
    print("KERNEL_OK")
</pallas_src>

<mosaic_0001>
module attributes {stable_mosaic.version = 11 : i64} {
  func.func @_attn_general_kernel(%arg0: i32, %arg1: i32, %arg2: memref<2x32xf32, #tpu.memory_space<vmem>>, %arg3: memref<32x32xf32, #tpu.memory_space<vmem>>, %arg4: memref<1x32xf32, #tpu.memory_space<vmem>>, %arg5: memref<8x2x32xf32, #tpu.memory_space<vmem>>, %arg6: memref<8x2xf32, #tpu.memory_space<vmem>>, %arg7: memref<2x32xf32, #tpu.memory_space<vmem>>, %arg8: memref<1x2xf32, #tpu.memory_space<vmem>>) attributes {dimension_semantics = [#tpu.dimension_semantics<parallel>, #tpu.dimension_semantics<arbitrary>], iteration_bounds = array<i64: 1, 1>, scalar_prefetch = 0 : i64, scratch_operands = 2 : i64, tpu.core_type = #tpu.core_type<tc>, window_params = [{transform_indices = @transform_0, window_bounds = array<i64: 2, 32>}, {pipeline_mode = #tpu.pipeline_mode<synchronous>, transform_indices = @transform_1, window_bounds = array<i64: 32, 32>}, {pipeline_mode = #tpu.pipeline_mode<synchronous>, transform_indices = @transform_2, window_bounds = array<i64: 1, 32>}, {transform_indices = @transform_3, window_bounds = array<i64: 8, 2, 32>}, {transform_indices = @transform_4, window_bounds = array<i64: 8, 2>}]} {
    %c0_i32 = arith.constant 0 : i32
    %0 = arith.cmpi eq, %arg1, %c0_i32 : i32
    %1 = arith.extui %0 : i1 to i32
    %c0_i32_0 = arith.constant 0 : i32
    %2 = arith.cmpi ne, %1, %c0_i32_0 : i32
    scf.if %2 {
      %c0_8 = arith.constant 0 : index
      %c0_9 = arith.constant 0 : index
      %16 = vector.load %arg2[%c0_8, %c0_9] : memref<2x32xf32, #tpu.memory_space<vmem>>, vector<2x32xf32>
      %c0_10 = arith.constant 0 : index
      %c0_11 = arith.constant 0 : index
      %17 = vector.load %arg3[%c0_10, %c0_11] : memref<32x32xf32, #tpu.memory_space<vmem>>, vector<32x32xf32>
      %cst_12 = arith.constant dense<0.000000e+00> : vector<2x32xf32>
      %18 = tpu.matmul %16, %17, %cst_12 {dimension_numbers = #tpu.dot_dimension_numbers<[1], [0], [0], [1], [0, 0, 1, 1], [], []>} : vector<2x32xf32>, vector<32x32xf32>, vector<2x32xf32> -> vector<2x32xf32>
      %c0_13 = arith.constant 0 : index
      %c0_14 = arith.constant 0 : index
      %19 = vector.load %arg7[%c0_13, %c0_14] : memref<2x32xf32, #tpu.memory_space<vmem>>, vector<2x32xf32>
      tpu.vector_store %arg7[%c0_13, %c0_14], %18 {strides = array<i32>} : memref<2x32xf32, #tpu.memory_space<vmem>>, vector<2x32xf32>,
      %c0_15 = arith.constant 0 : index
      %c0_16 = arith.constant 0 : index
      %20 = vector.load %arg4[%c0_15, %c0_16] : memref<1x32xf32, #tpu.memory_space<vmem>>, vector<1x32xf32>
      %21 = vector.shape_cast %20 : vector<1x32xf32> to vector<1x1x32xf32>
      %22 = vector.shape_cast %16 : vector<2x32xf32> to vector<1x2x32xf32>
      %23 = vector.broadcast %21 : vector<1x1x32xf32> to vector<1x2x32xf32>
      %24 = arith.mulf %23, %22 : vector<1x2x32xf32>
      %cst_17 = arith.constant dense<0.000000e+00> : vector<1x2xf32>
      %25 = vector.multi_reduction <add>, %24, %cst_17 [2] : vector<1x2x32xf32> to vector<1x2xf32>
      %c0_18 = arith.constant 0 : index
      %c0_19 = arith.constant 0 : index
      %26 = vector.load %arg8[%c0_18, %c0_19] : memref<1x2xf32, #tpu.memory_space<vmem>>, vector<1x2xf32>
      tpu.vector_store %arg8[%c0_18, %c0_19], %25 {strides = array<i32>} : memref<1x2xf32, #tpu.memory_space<vmem>>, vector<1x2xf32>,
    } else {
    }
    %c0 = arith.constant 0 : index
    %c0_1 = arith.constant 0 : index
    %c0_2 = arith.constant 0 : index
    %3 = vector.load %arg5[%c0, %c0_1, %c0_2] : memref<8x2x32xf32, #tpu.memory_space<vmem>>, vector<8x2x32xf32>
    %c0_3 = arith.constant 0 : index
    %c0_4 = arith.constant 0 : index
    %4 = vector.load %arg7[%c0_3, %c0_4] : memref<2x32xf32, #tpu.memory_space<vmem>>, vector<2x32xf32>
    %5 = vector.shape_cast %4 : vector<2x32xf32> to vector<1x2x32xf32>
    %6 = vector.broadcast %5 : vector<1x2x32xf32> to vector<8x2x32xf32>
    %7 = arith.mulf %3, %6 : vector<8x2x32xf32>
    %cst = arith.constant dense<0.000000e+00> : vector<8x2xf32>
    %8 = vector.multi_reduction <add>, %7, %cst [2] : vector<8x2x32xf32> to vector<8x2xf32>
    %c8_i32 = arith.constant 8 : i32
    %9 = arith.muli %arg1, %c8_i32 : i32
    %10 = tpu.assume_multiple %9, 8 : i32
    %11 = arith.index_cast %10 : i32 to index
    %c0_5 = arith.constant 0 : index
    %12 = vector.load %arg6[%11, %c0_5] : memref<8x2xf32, #tpu.memory_space<vmem>>, vector<8x2xf32>
    tpu.vector_store %arg6[%11, %c0_5], %8 {strides = array<i32>} : memref<8x2xf32, #tpu.memory_space<vmem>>, vector<8x2xf32>,
    %c0_i32_6 = arith.constant 0 : i32
    %13 = arith.cmpi eq, %arg1, %c0_i32_6 : i32
    %14 = arith.extui %13 : i1 to i32
    %c0_i32_7 = arith.constant 0 : i32
    %15 = arith.cmpi ne, %14, %c0_i32_7 : i32
    scf.if %15 {
      %c0_8 = arith.constant 0 : index
      %c0_9 = arith.constant 0 : index
      %16 = vector.load %arg6[%c0_8, %c0_9] : memref<8x2xf32, #tpu.memory_space<vmem>>, vector<8x2xf32>
      %c0_10 = arith.constant 0 : index
      %c0_11 = arith.constant 0 : index
      %17 = vector.load %arg8[%c0_10, %c0_11] : memref<1x2xf32, #tpu.memory_space<vmem>>, vector<1x2xf32>
      %18 = vector.broadcast %17 : vector<1x2xf32> to vector<8x2xf32>
      %19 = arith.addf %16, %18 : vector<8x2xf32>
      %cst_12 = arith.constant dense<0xFF800000> : vector<2xf32>
      %20 = vector.multi_reduction <maximumf>, %19, %cst_12 [0] : vector<8x2xf32> to vector<2xf32>
      %21 = vector.shape_cast %20 : vector<2xf32> to vector<1x2xf32>
      %22 = vector.broadcast %21 : vector<1x2xf32> to vector<8x2xf32>
      %23 = arith.subf %19, %22 : vector<8x2xf32>
      %24 = math.exp %23 : vector<8x2xf32>
      %cst_13 = arith.constant dense<0.000000e+00> : vector<2xf32>
      %25 = vector.multi_reduction <add>, %24, %cst_13 [0] : vector<8x2xf32> to vector<2xf32>
      %26 = vector.shape_cast %25 : vector<2xf32> to vector<1x2xf32>
      %27 = tpu.reciprocal %26 : vector<1x2xf32> -> vector<1x2xf32>
      %28 = vector.broadcast %27 : vector<1x2xf32> to vector<8x2xf32>
      %29 = arith.mulf %24, %28 : vector<8x2xf32>
      %c0_14 = arith.constant 0 : index
      %c0_15 = arith.constant 0 : index
      %30 = vector.load %arg6[%c0_14, %c0_15] : memref<8x2xf32, #tpu.memory_space<vmem>>, vector<8x2xf32>
      tpu.vector_store %arg6[%c0_14, %c0_15], %29 {strides = array<i32>} : memref<8x2xf32, #tpu.memory_space<vmem>>, vector<8x2xf32>,
    } else {
    }
    return
  }
  func.func @transform_0(%arg0: i32, %arg1: i32) -> (i32, i32) {
    %c0_i32 = arith.constant 0 : i32
    %c0_i32_0 = arith.constant 0 : i32
    return %arg0, %c0_i32 : i32, i32
  }
  func.func @transform_1(%arg0: i32, %arg1: i32) -> (i32, i32) {
    %c0_i32 = arith.constant 0 : i32
    %c0_i32_0 = arith.constant 0 : i32
    %c0_i32_1 = arith.constant 0 : i32
    return %c0_i32, %c0_i32_0 : i32, i32
  }
  func.func @transform_2(%arg0: i32, %arg1: i32) -> (i32, i32) {
    %c0_i32 = arith.constant 0 : i32
    %c0_i32_0 = arith.constant 0 : i32
    %c0_i32_1 = arith.constant 0 : i32
    return %c0_i32, %c0_i32_0 : i32, i32
  }
  func.func @transform_3(%arg0: i32, %arg1: i32) -> (i32, i32, i32) {
    %c0_i32 = arith.constant 0 : i32
    %c0_i32_0 = arith.constant 0 : i32
    return %arg1, %arg0, %c0_i32 : i32, i32, i32
  }
  func.func @transform_4(%arg0: i32, %arg1: i32) -> (i32, i32) {
    %c0_i32 = arith.constant 0 : i32
    %c0_i32_0 = arith.constant 0 : i32
    return %c0_i32, %arg0 : i32, i32
  }
}

</mosaic_0001>

<bundles_post_ra>
// kernel: tpu_custom_call.1
= control target key start
LH: loop header
LB: loop body
LE: loop exit
PB: predicated region body
PF: predicated region fallthrough
CT: control target
= control target key end

     0   :  { %9 = vsyncpa [#allocation5], 0  ;;  %s509_s0 = inlined_call_operand.hbm [shape: f32[2,32], index: 0, kind: input, shape index: {}]   ;;  %s510_s1 = inlined_call_operand.hbm [shape: f32[32,32], index: 1, kind: input, shape index: {}]   ;;  %s511_s2 = inlined_call_operand.vmem [shape: f32[1,32], index: 2, kind: input, shape index: {}]   ;;  %s512_s3 = inlined_call_operand.hbm [shape: f32[8,2,32], index: 3, kind: input, shape index: {}]   ;;  %s513_s4 = inlined_call_operand.vmem [shape: f32[8,2], index: 4, kind: output, shape index: {}]  }
   0x1   :  { %10 = vsyncpa [#allocation7], 0  ;;  %s412_s15 = smov [#allocation6]   ;;  %s342_s19 = scalar_lea.hbm %s510_s1, 512 }
   0x2   :  { %s26_s16 = sshll.u32 %s412_s15, 4  ;;  %p343_p0 = scmp.ne.s32.totalorder %s510_s1, %s342_s19  ;;  %s27_s16 = int_to_ptr.vmem [resolvable:$true] %s26_s16 }
   0x3   :  { %p346_p1 = scmp.lt.u32.totalorder %s342_s19, %s510_s1 }
   0x5   :  { %p348_p2 = pnand %p346_p1, %p343_p0 }
   0x7   :  { %351 = shalt.err (!%p348_p2)
}
   0x8   :  { %s352_s24 = scalar_lea.vmem %s27_s16, 512  ;;  %p357_p4 = scmp.lt.s32.totalorder %s27_s16, %s27_s16 }
   0x9   :  { %p353_p3 = scmp.ne.s32.totalorder %s27_s16, %s352_s24  ;;  %p358_p5 = scmp.lt.s32.totalorder %s352_s24, %s352_s24 }
   0xb   :  { %p359_p6 = por %p358_p5, %p357_p4 }
   0xd   :  { %p360_p7 = pnand %p359_p6, %p353_p3 }
   0xf   :  { %363 = shalt.err (!%p360_p7)
}
  0x10   :  { %s413_s25 = smov 128   ;;  %s414_s26 = smov 8  }
  0x11   :  { %32 = dma.hbm_to_vmem [thread:$0]  %s510_s1, 512, %s27_s16, [#allocation7], %s413_s25, %s413_s25, %s414_s26  }
  0x12   :  { %s415_s29 = smov [#allocation4]   ;;  %s416_s5 = smov [#allocation8]  }
  0x13   :  { %s17_s30 = sshll.u32 %s415_s29, 4  ;;  %s40_s6 = sshll.u32 %s416_s5, 4  ;;  %s18_s30 = int_to_ptr.vmem [resolvable:$true] %s17_s30  ;;  %s41_s6 = int_to_ptr.vmem [resolvable:$true] %s40_s6 }
  0x14   :  { %s364_s9 = scalar_lea.hbm %s509_s0, 32 }
  0x15   :  { %p365_p8 = scmp.ne.s32.totalorder %s509_s0, %s364_s9  ;;  %p368_p9 = scmp.lt.u32.totalorder %s364_s9, %s509_s0 }
  0x17   :  { %p370_p10 = pnand %p368_p9, %p365_p8 }
  0x19   :  { %373 = shalt.err (!%p370_p10)
}
  0x1a   :  { %s374_s1 = scalar_lea.vmem %s18_s30, 32  ;;  %p379_p12 = scmp.lt.s32.totalorder %s18_s30, %s18_s30 }
  0x1b   :  { %p375_p11 = scmp.ne.s32.totalorder %s18_s30, %s374_s1  ;;  %p380_p13 = scmp.lt.s32.totalorder %s374_s1, %s374_s1 }
  0x1d   :  { %p381_p0 = por %p380_p13, %p379_p12 }
  0x1f   :  { %p382_p1 = pnand %p381_p0, %p375_p11 }
  0x21   :  { %385 = shalt.err (!%p382_p1)
}
  0x22   :  { %20 = dma.hbm_to_vmem [thread:$0]  %s509_s0, 32, %s18_s30, [#allocation5]  }
  0x23   :  { %s386_s18 = scalar_lea.hbm %s512_s3, 256 }
  0x24   :  { %p387_p2 = scmp.ne.s32.totalorder %s512_s3, %s386_s18  ;;  %p390_p3 = scmp.lt.u32.totalorder %s386_s18, %s512_s3 }
  0x26   :  { %p392_p4 = pnand %p390_p3, %p387_p2 }
  0x28   :  { %395 = shalt.err (!%p392_p4)
}
  0x29   :  { %s396_s23 = scalar_lea.vmem %s41_s6, 256  ;;  %p401_p6 = scmp.lt.s32.totalorder %s41_s6, %s41_s6 }
  0x2a   :  { %p397_p5 = scmp.ne.s32.totalorder %s41_s6, %s396_s23  ;;  %p402_p7 = scmp.lt.s32.totalorder %s396_s23, %s396_s23 }
  0x2c   :  { %p403_p8 = por %p402_p7, %p401_p6 }
  0x2e   :  { %p404_p9 = pnand %p403_p8, %p397_p5 }
  0x30   :  { %407 = shalt.err (!%p404_p9)
}
  0x31   :  { %s417_s0 = smov 32   ;;  %s418_s24 = smov 2  }
  0x32   :  { %46 = dma.hbm_to_vmem [thread:$0]  %s512_s3, 256, %s41_s6, [#allocation7], %s417_s0, %s417_s0, %s418_s24  }
  0x33   :  { %408 = dma.done.wait [#allocation5], 32  }
  0x34   :  { %409 = vsyncadd [#allocation5], 4294967264 }
  0x35   :  { %410 = dma.done.wait [#allocation7], 768  }
  0x36   :  { %411 = vsyncadd [#allocation7], 4294966528  ;;  %v419_v0 = vmov 0.0|0.0   ;;  %vm420_vm0 = vmmov 0   ;;  %v421_v1 = vmov 0.0   ;;  %v61_v2 = vld [vmem:[#allocation6] sm:$0xff]  ;;  %v153_v39 = vlaneseq }
  0x37   :  { %322 = vmatprep.subr.bf16.mxu0 %v419_v0  ;;  %319 = vmatprep.mubr.msk.f32.mxu0 %vm420_vm0, %v421_v1  ;;  %v62_v3 = vld [vmem:[#allocation6 + $0x8] sm:$0xff]  ;;  %v63_v4 = vld [vmem:[#allocation6 + $0x10] sm:$0xff]  ;;  %v64_v6 = vld [vmem:[#allocation6 + $0x18] sm:$0xff]  ;;  %vm65_vm1 = vcmask 261120   ;;  %vm139_vm2 = vcmask 254976   ;;  %vm247_vm3 = vcmask 1041409  }
  0x38   :  { %v323_v5 = vpack.c.bf16 %v62_v3, %v61_v2  ;;  %v326_v7 = vpack.c.bf16 %v64_v6, %v63_v4  ;;  %v60_v8 = vld [vmem:[#allocation4] sm:$0x3]  ;;  %v164_v11 = vld [vmem:[#allocation8 + $0x4] sm:$0x3]  ;;  %v162_v12 = vld [vmem:[#allocation8] sm:$0x3] }
  0x39   :  { %v165_v14 = vld [vmem:[#allocation8 + $0x6] sm:$0x3]  ;;  %v163_v15 = vld [vmem:[#allocation8 + $0x2] sm:$0x3]  ;;  %v167_v22 = vld [vmem:[#allocation8 + $0xa] sm:$0x3] }
  0x3a   :  { %324 = vmatpush3.bf16.msra.mxu0 %v323_v5  ;;  %v166_v23 = vld [vmem:[#allocation8 + $0x8] sm:$0x3]  ;;  %v169_v28 = vld [vmem:[#allocation8 + $0xe] sm:$0x3]  ;;  %v168_v29 = vld [vmem:[#allocation8 + $0xc] sm:$0x3] }
  0x3b   :  { %325 = vmatprep.subr.bf16.mxu0 %v419_v0  ;;  %v304_v30 = vld [vmem:[%s511_s2] ss:$0 sm:$0xff]  ;;  %v154_v40 = vand.u32 127, %v153_v39  ;;  %v156_v41 = vshrl.u32 %v153_v39, 7  ;;  %vm249_vm4 = vcmask 1042434   ;;  %vm251_vm5 = vcmask 1043459  }
  0x3c   :  { %v148_v35 = vmul.f32 %v304_v30, %v60_v8  ;;  %vm253_vm6 = vcmask 1044484   ;;  %vm255_vm7 = vcmask 1045509   ;;  %vm257_vm8 = vcmask 1046534  }
  0x3d   :  { %v157_v44 = vsub.s32 %v154_v40, %v156_v41  ;;  %vm259_vm9 = vcmask 1047559   ;;  %vm263_vm10 = vcmask 15360   ;;  %vm160_vm11 = vcmask 8192  }
  0x3e   :  { %327 = vmatpush3.bf16.msra.mxu0 %v326_v7  ;;  %v149_v38 = vsel %vm139_vm2, %v148_v35, 0.0 }
  0x41   :  { %320 = vmatmul.mubr.msk.f32.vlgmr.msra.gmra.mrb[0].mxu0 %vm65_vm1, %v60_v8 }
 0x114   :  { %v135_v9 = vpop.f32.mrb[0].mxu0 }
 0x115   :  { %140 = vst.msk [vmem:[#allocation2] sm:$0x3] %vm139_vm2, %v135_v9  ;;  %v321_v10 = vpop.f32.mrb[1].mxu0 }
 0x11c   :  { %v170_v13 = vld [vmem:[#allocation2] sm:$0x3] }
 0x11d   :  { %v173_v16 = vmul.f32 %v170_v13, %v164_v11  ;;  %v171_v17 = vmul.f32 %v170_v13, %v162_v12  ;;  %v174_v20 = vmul.f32 %v170_v13, %v165_v14  ;;  %v172_v21 = vmul.f32 %v170_v13, %v163_v15 }
 0x11e   :  { %v176_v26 = vmul.f32 %v170_v13, %v167_v22  ;;  %v175_v27 = vmul.f32 %v170_v13, %v166_v23  ;;  %v178_v33 = vmul.f32 %v170_v13, %v169_v28  ;;  %v177_v34 = vmul.f32 %v170_v13, %v168_v29 }
 0x11f   :  { %v186_v18 = vsel %vm139_vm2, %v173_v16, 0.0  ;;  %v180_v19 = vsel %vm139_vm2, %v171_v17, 0.0  ;;  %v189_v24 = vsel %vm139_vm2, %v174_v20, 0.0  ;;  %v183_v25 = vsel %vm139_vm2, %v172_v21, 0.0 }
 0x120   :  { %187 = vadd.xlane.f32.xlu1 %v186_v18  ;;  %181 = vadd.xlane.f32.xlu0 %v180_v19  ;;  %v195_v31 = vsel %vm139_vm2, %v176_v26, 0.0  ;;  %v192_v32 = vsel %vm139_vm2, %v175_v27, 0.0  ;;  %v201_v36 = vsel %vm139_vm2, %v178_v33, 0.0  ;;  %v198_v37 = vsel %vm139_vm2, %v177_v34, 0.0 }
 0x124   :  { %190 = vadd.xlane.f32.xlu1 %v189_v24  ;;  %184 = vadd.xlane.f32.xlu0 %v183_v25 }
 0x128   :  { %196 = vadd.xlane.f32.xlu1 %v195_v31  ;;  %193 = vadd.xlane.f32.xlu0 %v192_v32 }
 0x12c   :  { %202 = vadd.xlane.f32.xlu1 %v201_v36  ;;  %199 = vadd.xlane.f32.xlu0 %v198_v37 }
 0x130   :  { %150 = vadd.xlane.f32.xlu0 %v149_v38 }
 0x1ad   :  { %v188_v42 = vpop.xlane.xlu1 %187  ;;  %v182_v43 = vpop.xlane.xlu0 %181 }
 0x1ae   :  { %v218_v47 = vrot.slane %v182_v43, %v157_v44  ;;  %v226_v49 = vrot.slane %v188_v42, %v157_v44 }
 0x1b1   :  { %v191_v45 = vpop.xlane.xlu1 %190  ;;  %v185_v46 = vpop.xlane.xlu0 %184 }
 0x1b2   :  { %v222_v48 = vrot.slane %v185_v46, %v157_v44  ;;  %v230_v50 = vrot.slane %v191_v45, %v157_v44 }
 0x1b4   :  { %v248_v51 = vsel %vm247_vm3, %v222_v48, %v218_v47 }
 0x1b5   :  { %v250_v52 = vsel %vm249_vm4, %v226_v49, %v248_v51  ;;  %v197_v53 = vpop.xlane.xlu1 %196  ;;  %v194_v54 = vpop.xlane.xlu0 %193 }
 0x1b6   :  { %v252_v55 = vsel %vm251_vm5, %v230_v50, %v250_v52  ;;  %v234_v56 = vrot.slane %v194_v54, %v157_v44  ;;  %v238_v57 = vrot.slane %v197_v53, %v157_v44 }
 0x1b8   :  { %v254_v58 = vsel %vm253_vm6, %v234_v56, %v252_v55 }
 0x1b9   :  { %v203_v59 = vpop.xlane.xlu1 %202  ;;  %v200_v60 = vpop.xlane.xlu0 %199  ;;  %v256_v63 = vsel %vm255_vm7, %v238_v57, %v254_v58 }
 0x1ba   :  { %v246_v61 = vrot.slane %v203_v59, %v157_v44  ;;  %v242_v62 = vrot.slane %v200_v60, %v157_v44 }
 0x1bc   :  { %v258_v0 = vsel %vm257_vm8, %v242_v62, %v256_v63 }
 0x1bd   :  { %v260_v1 = vsel %vm259_vm9, %v246_v61, %v258_v0  ;;  %v151_v2 = vpop.xlane.xlu0 %150 }
 0x1be   :  { %264 = vst.msk [vmem:[%s513_s4] sm:$0xff] %vm263_vm10, %v260_v1  ;;  %v158_v3 = vrot.slane %v151_v2, %v157_v44 }
 0x1c0   :  { %161 = vst.msk [vmem:[#allocation3] sm:$0x1] %vm160_vm11, %v158_v3 }
 0x1c5   :  { %v268_v4 = vld [vmem:[%s513_s4] sm:$0xff] }
 0x1c7   :  { %v305_v5 = vld [vmem:[#allocation3] ss:$0 sm:$0xff] }
 0x1c8   :  { %v276_v6 = vadd.f32 %v305_v5, %v268_v4 }
 0x1ca   :  { %v277_v7 = vsel %vm263_vm10, %v276_v6, -inf }
 0x1cb   :  { %v278_v8 = vrot.slane %v277_v7, 4 }
 0x1cd   :  { %v279_v9 = vmax.f32 %v277_v7, %v278_v8 }
 0x1cf   :  { %v280_v10 = vrot.slane %v279_v9, 2 }
 0x1d1   :  { %v281_v11 = vmax.f32 %v279_v9, %v280_v10 }
 0x1d3   :  { %v282_v12 = vrot.slane %v281_v11, 1 }
 0x1d5   :  { %v283_v13 = vmax.f32 %v281_v11, %v282_v12 }
 0x1d7   :  { %v284_v14 = vsub.f32 %v276_v6, %v283_v13 }
 0x1d9   :  { %v285_v15 = vmul.f32 1.442695, %v284_v14 }
 0x1db   :  { %338 = vpow2.f32 %v285_v15 }
 0x1e5   :  { %v339_v16 = vpop.eup %338 }
 0x1e6   :  { %v287_v17 = vsel %vm263_vm10, %v339_v16, 0.0 }
 0x1e7   :  { %v288_v18 = vrot.slane %v287_v17, 4 }
 0x1e9   :  { %v289_v19 = vadd.f32 %v288_v18, %v287_v17 }
 0x1eb   :  { %v290_v20 = vrot.slane %v289_v19, 2 }
 0x1ed   :  { %v291_v21 = vadd.f32 %v290_v20, %v289_v19 }
 0x1ef   :  { %v292_v22 = vrot.slane %v291_v21, 1 }
 0x1f1   :  { %v293_v23 = vadd.f32 %v292_v22, %v291_v21 }
 0x1f3   :  { %340 = vrcp.f32 %v293_v23 }
 0x1fd   :  { %v341_v24 = vpop.eup %340 }
 0x1fe   :  { %v295_v25 = vmul.f32 %v341_v24, %v339_v16 }
 0x200   :  { %296 = vst.msk [vmem:[%s513_s4] sm:$0xff] %vm263_vm10, %v295_v25 }
 0x201   :  { %301 = vsyncpa [#allocation5], 1 }
 0x202   :  { %302 = vsyncpa [#allocation7], 1 }

</bundles_post_ra>
